<compile_context>
chip_gen: v7x
topology: tpu7x:2x2x1
jax: 0.10.0
libtpu: 0.0.40
codegen_flags: <defaults>
</compile_context>

<pallas_src>
import functools

import jax
import jax.numpy as jnp
from jax.experimental import pallas as pl
from jax.experimental.pallas import tpu as pltpu

BN_EPS = 1e-5


# --------------------------------------------------------------------------- #
# Small helpers
# --------------------------------------------------------------------------- #
def _vmem_capacity_bytes():
    """Per-core VMEM capacity; conservative fallback if the query fails."""
    try:
        return int(pltpu.get_tpu_info().vmem_capacity_bytes)
    except Exception:
        return 64 << 20          # v7x per-TensorCore VMEM (smallest of the gens)


def _padded_bytes(shape, itemsize=4):
    """Rough VMEM footprint of an f32 array padded to (8, 128) vreg tiles."""
    shape = tuple(int(s) for s in shape)
    if len(shape) == 0:
        return 8 * 128 * itemsize
    if len(shape) == 1:
        shape = (1,) + shape
    lead = 1
    for d in shape[:-2]:
        lead *= d
    sub = -(-shape[-2] // 8) * 8
    lane = -(-shape[-1] // 128) * 128
    return lead * sub * lane * itemsize


def _fill_padded_row(x_ref, xp_ref, *, C_in, L, padding, right_pad):
    """Copy one (C_in, L) batch row into the zero-padded VMEM scratch row."""
    if padding > 0:
        xp_ref[:, :padding] = jnp.zeros((C_in, padding), jnp.float32)
    if right_pad > 0:
        xp_ref[:, padding + L:] = jnp.zeros((C_in, right_pad), jnp.float32)
    xp_ref[:, padding:padding + L] = x_ref[...].astype(xp_ref.dtype)


# --------------------------------------------------------------------------- #
# Fast path: everything fused in one pallas_call (output resident in VMEM)
# --------------------------------------------------------------------------- #
def _fused_kernel(x_ref, w_ref, b_ref, g_ref, be_ref, o_ref, xp_ref, taps_ref, *,
                  N, C_in, C_out, K, L, L_out, padding, dilation):
    n = pl.program_id(0)

    # Zero the scratch once (grid is sequential/"arbitrary"); only the
    # [padding, padding+L) window is rewritten per batch row afterwards, so the
    # pad columns stay zero.
    @pl.when(n == 0)
    def _zero_scratch():
        xp_ref[...] = jnp.zeros_like(xp_ref)

    # This row, padded in VMEM (no HBM pad copy).
    xp_ref[:, padding:padding + L] = x_ref[...].astype(xp_ref.dtype)

    # Stack the K dilated taps -> one fused MXU matmul.
    for k in range(K):
        taps_ref[k * C_in:(k + 1) * C_in, :] = \
            xp_ref[:, k * dilation:k * dilation + L_out]
    y = jnp.dot(w_ref[...], taps_ref[...], preferred_element_type=jnp.float32)
    y = y + b_ref[...]                                  # Conv1d bias

    # Store the pre-BN activations into the VMEM-resident output block.
    o_ref[n, :, :] = y.astype(o_ref.dtype)

    # After the last row: exact training-mode BatchNorm (two-step mean/var over
    # the resident pre-activations -> no E[y^2]-E[y]^2 cancellation), affine,
    # ReLU, all in place.  The block is written back to HBM once, afterwards.
    @pl.when(n == N - 1)
    def _finalize():
        cnt = jnp.float32(N * L_out)
        y_all = o_ref[...].astype(jnp.float32)                       # (N,C,L)
        mean = jnp.sum(jnp.sum(y_all, axis=2, keepdims=True),
                       axis=0, keepdims=True) / cnt                  # (1,C,1)
        diff = y_all - mean
        var = jnp.sum(jnp.sum(diff * diff, axis=2, keepdims=True),
                      axis=0, keepdims=True) / cnt
        scale = g_ref[...] * jax.lax.rsqrt(var + BN_EPS)
        shift = be_ref[...] - mean * scale
        o_ref[...] = jnp.maximum(y_all * scale + shift, 0.0).astype(o_ref.dtype)


def _fused_forward(x, wflat, bias, gamma, beta, *, K, padding, dilation, L_out,
                   vmem_limit):
    N, C_in, L = x.shape
    C_out = wflat.shape[0]
    Lp = L + 2 * padding                     # max tap end = (K-1)*d + L_out = L+2p

    kernel = functools.partial(
        _fused_kernel, N=N, C_in=C_in, C_out=C_out, K=K, L=L, L_out=L_out,
        padding=padding, dilation=dilation)

    return pl.pallas_call(
        kernel,
        out_shape=jax.ShapeDtypeStruct((N, C_out, L_out), jnp.float32),
        grid=(N,),
        in_specs=[
            pl.BlockSpec((None, C_in, L), lambda n: (n, 0, 0)),        # x row
            pl.BlockSpec((C_out, K * C_in), lambda n: (0, 0)),         # weight
            pl.BlockSpec((C_out, 1), lambda n: (0, 0)),                # bias
            pl.BlockSpec((1, C_out, 1), lambda n: (0, 0, 0)),          # gamma
            pl.BlockSpec((1, C_out, 1), lambda n: (0, 0, 0)),          # beta
        ],
        out_specs=pl.BlockSpec((N, C_out, L_out), lambda n: (0, 0, 0)),
        scratch_shapes=[
            pltpu.VMEM((C_in, Lp), jnp.float32),            # padded input row
            pltpu.VMEM((K * C_in, L_out), jnp.float32),     # stacked taps
        ],
        compiler_params=pltpu.CompilerParams(
            dimension_semantics=("arbitrary",),
            vmem_limit_bytes=vmem_limit),
    )(x, wflat, bias, gamma, beta)


# --------------------------------------------------------------------------- #
# General path: two passes, L tiled, per-batch-row partial statistics
# --------------------------------------------------------------------------- #
def _tile_conv(xp_ref, taps_ref, w_ref, base, *, K, C_in, dilation, l_tile):
    for k in range(K):
        taps_ref[k * C_in:(k + 1) * C_in, :] = \
            xp_ref[:, pl.ds(base + k * dilation, l_tile)]
    return jnp.dot(w_ref[...], taps_ref[...], preferred_element_type=jnp.float32)


def _tile_base(lt, *, l_tile, num_lt):
    if num_lt == 1:
        return 0
    base = lt * l_tile
    if l_tile % 128 == 0:
        base = pl.multiple_of(base, 128)
    return base


def _stats_kernel(x_ref, w_ref, sum_ref, sq_ref, xp_ref, taps_ref, *,
                  K, C_in, L, padding, right_pad, dilation, l_tile, l_out, num_lt):
    lt = pl.program_id(1)

    @pl.when(lt == 0)
    def _new_row():
        _fill_padded_row(x_ref, xp_ref, C_in=C_in, L=L,
                         padding=padding, right_pad=right_pad)
        sum_ref[...] = jnp.zeros_like(sum_ref)
        sq_ref[...] = jnp.zeros_like(sq_ref)

    base = _tile_base(lt, l_tile=l_tile, num_lt=num_lt)
    y = _tile_conv(xp_ref, taps_ref, w_ref, base,
                   K=K, C_in=C_in, dilation=dilation, l_tile=l_tile)
    if num_lt > 1:
        # Mask the ragged tail of the last L tile out of the statistics.
        col = lt * l_tile + jax.lax.broadcasted_iota(jnp.int32, y.shape, 1)
        y = jnp.where(col < l_out, y, 0.0)
    sum_ref[...] += jnp.sum(y, axis=1, keepdims=True)
    sq_ref[...] += jnp.sum(y * y, axis=1, keepdims=True)


def _norm_kernel(x_ref, w_ref, scale_ref, shift_ref, o_ref, xp_ref, taps_ref, *,
                 K, C_in, L, padding, right_pad, dilation, l_tile, num_lt):
    lt = pl.program_id(1)

    @pl.when(lt == 0)
    def _new_row():
        _fill_padded_row(x_ref, xp_ref, C_in=C_in, L=L,
                         padding=padding, right_pad=right_pad)

    base = _tile_base(lt, l_tile=l_tile, num_lt=num_lt)
    y = _tile_conv(xp_ref, taps_ref, w_ref, base,
                   K=K, C_in=C_in, dilation=dilation, l_tile=l_tile)
    o_ref[...] = jnp.maximum(y * scale_ref[...] + shift_ref[...], 0.0
                             ).astype(o_ref.dtype)


def _two_pass_forward(x, wflat, gamma, beta, *, K, padding, dilation, L_out,
                      vmem_cap):
    N, C_in, L = x.shape
    C_out = wflat.shape[0]

    # Generation-aware lane tile: larger on 128 MiB VMEM parts (v5e/v6e),
    # smaller on v7x (64 MiB).  Tiles are multiples of 128 -> lane-dense stores.
    max_l_tile = 16384 if vmem_cap >= (100 << 20) else 8192
    if L_out <= max_l_tile:
        l_tile, num_lt = L_out, 1
    else:
        l_tile = max_l_tile
        num_lt = pl.cdiv(L_out, l_tile)

    # Padded scratch row: every tap slice [lt*l_tile + k*d, +l_tile) is in bounds.
    Lp = num_lt * l_tile + (K - 1) * dilation
    right_pad = Lp - (padding + L)           # >= 0 by construction

    # TODO(synk): for extremely long L the whole (C_in, L) row (and its padded
    # VMEM copy) should be halo-tiled over L with manual DMA instead of being
    # held resident per batch row.

    working = (2 * _padded_bytes((C_in, L)) + _padded_bytes((C_in, Lp))
               + _padded_bytes((K * C_in, l_tile))
               + 2 * _padded_bytes((C_out, l_tile)) + (1 << 20))
    vmem_limit = int(min(max(2 * working, 32 << 20), int(0.85 * vmem_cap)))

    grid = (N, num_lt)
    x_spec = pl.BlockSpec((None, C_in, L), lambda n, lt: (n, 0, 0))
    w_spec = pl.BlockSpec((C_out, K * C_in), lambda n, lt: (0, 0))
    nvec_spec = pl.BlockSpec((None, C_out, 1), lambda n, lt: (n, 0, 0))
    cvec_spec = pl.BlockSpec((C_out, 1), lambda n, lt: (0, 0))
    scratch = [pltpu.VMEM((C_in, Lp), jnp.float32),
               pltpu.VMEM((K * C_in, l_tile), jnp.float32)]
    # Batch axis "parallel" (per-n outputs -> no shared accumulator, both v7x
    # TensorCores active); L-tile axis "arbitrary" (accumulation / scratch fill
    # ordering within each batch row).
    cparams = pltpu.CompilerParams(
        dimension_semantics=("parallel", "arbitrary"),
        vmem_limit_bytes=vmem_limit)

    # ---- Pass 1: per-(batch-row, channel) partial sums / sums of squares ----
    s_sum, s_sq = pl.pallas_call(
        functools.partial(_stats_kernel, K=K, C_in=C_in, L=L, padding=padding,
                          right_pad=right_pad, dilation=dilation,
                          l_tile=l_tile, l_out=L_out, num_lt=num_lt),
        out_shape=(jax.ShapeDtypeStruct((N, C_out, 1), jnp.float32),
                   jax.ShapeDtypeStruct((N, C_out, 1), jnp.float32)),
        grid=grid,
        in_specs=[x_spec, w_spec],
        out_specs=(nvec_spec, nvec_spec),
        scratch_shapes=scratch,
        compiler_params=cparams,
    )(x, wflat)

    # Fold training-mode BN (biased variance) + affine into per-channel
    # scale/shift.  Conv bias is omitted on this path: it cancels exactly in
    # (y - mean) and omitting it improves the E[y^2]-E[y]^2 conditioning.
    cnt = jnp.float32(N * L_out)
    mean = jnp.sum(s_sum[:, :, 0], axis=0) / cnt
    ex2 = jnp.sum(s_sq[:, :, 0], axis=0) / cnt
    var = jnp.maximum(ex2 - mean * mean, 0.0)
    scale = gamma * jax.lax.rsqrt(var + BN_EPS)
    shift = beta - mean * scale

    # ---- Pass 2: conv tile + normalize + ReLU, lane-dense (N, C_out, L_out) --
    return pl.pallas_call(
        functools.partial(_norm_kernel, K=K, C_in=C_in, L=L, padding=padding,
                          right_pad=right_pad, dilation=dilation,
                          l_tile=l_tile, num_lt=num_lt),
        out_shape=jax.ShapeDtypeStruct((N, C_out, L_out), jnp.float32),
        grid=grid,
        in_specs=[x_spec, w_spec, cvec_spec, cvec_spec],
        out_specs=pl.BlockSpec((None, C_out, l_tile), lambda n, lt: (n, 0, lt)),
        scratch_shapes=scratch,
        compiler_params=cparams,
    )(x, wflat, scale.reshape(C_out, 1), shift.reshape(C_out, 1))


# --------------------------------------------------------------------------- #
# Public wrapper
# --------------------------------------------------------------------------- #
def standard_conv1d_pallas(x, weight, gamma, beta, conv_bias=None, *,
                           stride=1, padding=0, dilation=1):
    """x: (N, C_in, L); weight: (C_out, C_in, K).  Returns (N, C_out, L_out)
    of Conv1d -> BatchNorm1d (training-mode batch statistics) -> ReLU."""
    if stride != 1:
        # TODO(synk): stride > 1 needs strided lane slicing / phase-split layout.
        raise NotImplementedError("standard_conv1d_pallas: only stride == 1")
    N, C_in, L = x.shape
    C_out, C_in_w, K = weight.shape
    if C_in_w != C_in:
        # TODO(synk): grouped conv (groups > 1) not implemented.
        raise NotImplementedError("standard_conv1d_pallas: only groups == 1")

    L_out = L + 2 * padding - dilation * (K - 1)
    assert L_out > 0

    x = x.astype(jnp.float32)
    # (C_out, K*C_in) with rows matching the in-kernel tap stacking order.
    wflat = jnp.transpose(weight, (0, 2, 1)).reshape(C_out, K * C_in)
    wflat = wflat.astype(jnp.float32)
    bias = (jnp.zeros((C_out,), jnp.float32) if conv_bias is None
            else conv_bias.astype(jnp.float32))

    vmem_cap = _vmem_capacity_bytes()

    # Fast (single fused kernel) path when the resident output + row buffers
    # fit comfortably in VMEM on every TPU generation.
    fast_bytes = (_padded_bytes((N, C_out, L_out))
                  + 2 * _padded_bytes((C_in, L))
                  + _padded_bytes((C_in, L + 2 * padding))
                  + _padded_bytes((K * C_in, L_out))
                  + (256 << 10))
    fast_budget = min(8 << 20, vmem_cap // 4)

    if fast_bytes <= fast_budget:
        vmem_limit = int(min(max(2 * fast_bytes + (4 << 20), 16 << 20),
                             int(0.8 * vmem_cap)))
        return _fused_forward(
            x, wflat, bias.reshape(C_out, 1),
            gamma.reshape(1, C_out, 1).astype(jnp.float32),
            beta.reshape(1, C_out, 1).astype(jnp.float32),
            K=K, padding=padding, dilation=dilation, L_out=L_out,
            vmem_limit=vmem_limit)

    return _two_pass_forward(
        x, wflat, gamma.astype(jnp.float32), beta.astype(jnp.float32),
        K=K, padding=padding, dilation=dilation, L_out=L_out,
        vmem_cap=vmem_cap)


# --------------------------------------------------------------------------- #
# Pure-JAX reference (Conv1d + bias -> training-mode BN -> ReLU)
# --------------------------------------------------------------------------- #
def _reference(x, weight, conv_bias, gamma, beta, *, stride, padding, dilation):
    y = jax.lax.conv_general_dilated(
        x, weight,
        window_strides=(stride,),
        padding=[(padding, padding)],
        rhs_dilation=(dilation,),
        dimension_numbers=("NCH", "OIH", "NCH"),
    ) + conv_bias[None, :, None]
    mean = jnp.mean(y, axis=(0, 2), keepdims=True)
    var = jnp.mean((y - mean) ** 2, axis=(0, 2), keepdims=True)   # biased var
    y_hat = (y - mean) / jnp.sqrt(var + BN_EPS)
    return jnp.maximum(y_hat * gamma[None, :, None] + beta[None, :, None], 0.0)


if __name__ == "__main__":
    # StandardConv1d(in_channel=4, out_channel=8, kernel_size=3, stride=1, padding=1)
    N, C_in, L = 2, 4, 16
    C_out, K = 8, 3
    stride, padding, dilation = 1, 1, 1

    key = jax.random.PRNGKey(0)
    kx, kw, kb, kg, kbe = jax.random.split(key, 5)

    x = jax.random.normal(kx, (N, C_in, L), dtype=jnp.float32)
    weight = jax.random.normal(kw, (C_out, C_in, K), dtype=jnp.float32) * 0.1
    conv_bias = jax.random.normal(kb, (C_out,), dtype=jnp.float32) * 0.1
    gamma = 1.0 + 0.1 * jax.random.normal(kg, (C_out,), dtype=jnp.float32)
    beta = 0.1 * jax.random.normal(kbe, (C_out,), dtype=jnp.float32)

    run = jax.jit(functools.partial(standard_conv1d_pallas, stride=stride,
                                    padding=padding, dilation=dilation))
    out = jax.block_until_ready(run(x, weight, gamma, beta, conv_bias=conv_bias))

    ref = _reference(x, weight, conv_bias, gamma, beta,
                     stride=stride, padding=padding, dilation=dilation)
    L_out = (L + 2 * padding - dilation * (K - 1) - 1) // stride + 1
    assert out.shape == (N, C_out, L_out), out.shape
    err = float(jnp.max(jnp.abs(out - ref)))
    assert err < 1e-3, err

    print("KERNEL_OK")
</pallas_src>

<mosaic_0001>
module attributes {stable_mosaic.version = 11 : i64} {
  func.func @_fused_kernel(%arg0: i32, %arg1: memref<1x4x16xf32, #tpu.memory_space<vmem>>, %arg2: memref<8x12xf32, #tpu.memory_space<vmem>>, %arg3: memref<8x1xf32, #tpu.memory_space<vmem>>, %arg4: memref<1x8x1xf32, #tpu.memory_space<vmem>>, %arg5: memref<1x8x1xf32, #tpu.memory_space<vmem>>, %arg6: memref<2x8x16xf32, #tpu.memory_space<vmem>>, %arg7: memref<4x18xf32, #tpu.memory_space<vmem>>, %arg8: memref<12x16xf32, #tpu.memory_space<vmem>>) attributes {dimension_semantics = [#tpu.dimension_semantics<arbitrary>], iteration_bounds = array<i64: 2>, scalar_prefetch = 0 : i64, scratch_operands = 2 : i64, tpu.core_type = #tpu.core_type<tc>, window_params = [{transform_indices = @transform_0, window_bounds = array<i64: 1, 4, 16>}, {pipeline_mode = #tpu.pipeline_mode<synchronous>, transform_indices = @transform_1, window_bounds = array<i64: 8, 12>}, {pipeline_mode = #tpu.pipeline_mode<synchronous>, transform_indices = @transform_2, window_bounds = array<i64: 8, 1>}, {pipeline_mode = #tpu.pipeline_mode<synchronous>, transform_indices = @transform_3, window_bounds = array<i64: 1, 8, 1>}, {pipeline_mode = #tpu.pipeline_mode<synchronous>, transform_indices = @transform_4, window_bounds = array<i64: 1, 8, 1>}, {pipeline_mode = #tpu.pipeline_mode<synchronous>, transform_indices = @transform_5, window_bounds = array<i64: 2, 8, 16>}]} {
    %c0_i32 = arith.constant 0 : i32
    %0 = arith.cmpi eq, %arg0, %c0_i32 : i32
    %1 = arith.extui %0 : i1 to i32
    %c0_i32_0 = arith.constant 0 : i32
    %2 = arith.cmpi ne, %1, %c0_i32_0 : i32
    scf.if %2 {
      %cst_22 = arith.constant 0.000000e+00 : f32
      %25 = vector.broadcast %cst_22 : f32 to vector<4x18xf32>
      %c0_23 = arith.constant 0 : index
      %c0_24 = arith.constant 0 : index
      %26 = vector.load %arg7[%c0_23, %c0_24] : memref<4x18xf32, #tpu.memory_space<vmem>>, vector<4x18xf32>
      tpu.vector_store %arg7[%c0_23, %c0_24], %25 {strides = array<i32>} : memref<4x18xf32, #tpu.memory_space<vmem>>, vector<4x18xf32>,
    } else {
    }
    %c0 = arith.constant 0 : index
    %c0_1 = arith.constant 0 : index
    %c0_2 = arith.constant 0 : index
    %3 = vector.load %arg1[%c0, %c0_1, %c0_2] : memref<1x4x16xf32, #tpu.memory_space<vmem>>, vector<1x4x16xf32>
    %4 = vector.shape_cast %3 : vector<1x4x16xf32> to vector<4x16xf32>
    %c0_3 = arith.constant 0 : index
    %c1 = arith.constant 1 : index
    %5 = vector.load %arg7[%c0_3, %c1] : memref<4x18xf32, #tpu.memory_space<vmem>>, vector<4x16xf32>
    tpu.vector_store %arg7[%c0_3, %c1], %4 {strides = array<i32>} : memref<4x18xf32, #tpu.memory_space<vmem>>, vector<4x16xf32>,
    %c0_4 = arith.constant 0 : index
    %c0_5 = arith.constant 0 : index
    %6 = vector.load %arg7[%c0_4, %c0_5] : memref<4x18xf32, #tpu.memory_space<vmem>>, vector<4x16xf32>
    %c0_6 = arith.constant 0 : index
    %c0_7 = arith.constant 0 : index
    %7 = vector.load %arg8[%c0_6, %c0_7] : memref<12x16xf32, #tpu.memory_space<vmem>>, vector<4x16xf32>
    tpu.vector_store %arg8[%c0_6, %c0_7], %6 {strides = array<i32>} : memref<12x16xf32, #tpu.memory_space<vmem>>, vector<4x16xf32>,
    %c0_8 = arith.constant 0 : index
    %c1_9 = arith.constant 1 : index
    %8 = vector.load %arg7[%c0_8, %c1_9] : memref<4x18xf32, #tpu.memory_space<vmem>>, vector<4x16xf32>
    %c4 = arith.constant 4 : index
    %c0_10 = arith.constant 0 : index
    %9 = vector.load %arg8[%c4, %c0_10] : memref<12x16xf32, #tpu.memory_space<vmem>>, vector<4x16xf32>
    tpu.vector_store %arg8[%c4, %c0_10], %8 {strides = array<i32>} : memref<12x16xf32, #tpu.memory_space<vmem>>, vector<4x16xf32>,
    %c0_11 = arith.constant 0 : index
    %c2 = arith.constant 2 : index
    %10 = vector.load %arg7[%c0_11, %c2] : memref<4x18xf32, #tpu.memory_space<vmem>>, vector<4x16xf32>
    %c8 = arith.constant 8 : index
    %c0_12 = arith.constant 0 : index
    %11 = vector.load %arg8[%c8, %c0_12] : memref<12x16xf32, #tpu.memory_space<vmem>>, vector<4x16xf32>
    tpu.vector_store %arg8[%c8, %c0_12], %10 {strides = array<i32>} : memref<12x16xf32, #tpu.memory_space<vmem>>, vector<4x16xf32>,
    %c0_13 = arith.constant 0 : index
    %c0_14 = arith.constant 0 : index
    %12 = vector.load %arg2[%c0_13, %c0_14] : memref<8x12xf32, #tpu.memory_space<vmem>>, vector<8x12xf32>
    %c0_15 = arith.constant 0 : index
    %c0_16 = arith.constant 0 : index
    %13 = vector.load %arg8[%c0_15, %c0_16] : memref<12x16xf32, #tpu.memory_space<vmem>>, vector<12x16xf32>
    %cst = arith.constant dense<0.000000e+00> : vector<8x16xf32>
    %14 = tpu.matmul %12, %13, %cst {dimension_numbers = #tpu.dot_dimension_numbers<[1], [0], [0], [1], [0, 0, 1, 1], [], []>} : vector<8x12xf32>, vector<12x16xf32>, vector<8x16xf32> -> vector<8x16xf32>
    %c0_17 = arith.constant 0 : index
    %c0_18 = arith.constant 0 : index
    %15 = vector.load %arg3[%c0_17, %c0_18] : memref<8x1xf32, #tpu.memory_space<vmem>>, vector<8x1xf32>
    %16 = vector.broadcast %15 : vector<8x1xf32> to vector<8x16xf32>
    %17 = arith.addf %14, %16 : vector<8x16xf32>
    %18 = arith.index_cast %arg0 : i32 to index
    %c0_19 = arith.constant 0 : index
    %c0_20 = arith.constant 0 : index
    %19 = vector.load %arg6[%18, %c0_19, %c0_20] : memref<2x8x16xf32, #tpu.memory_space<vmem>>, vector<1x8x16xf32>
    %20 = vector.shape_cast %19 : vector<1x8x16xf32> to vector<8x16xf32>
    %21 = vector.shape_cast %17 : vector<8x16xf32> to vector<1x8x16xf32>
    tpu.vector_store %arg6[%18, %c0_19, %c0_20], %21 {strides = array<i32>} : memref<2x8x16xf32, #tpu.memory_space<vmem>>, vector<1x8x16xf32>,
    %c1_i32 = arith.constant 1 : i32
    %22 = arith.cmpi eq, %arg0, %c1_i32 : i32
    %23 = arith.extui %22 : i1 to i32
    %c0_i32_21 = arith.constant 0 : i32
    %24 = arith.cmpi ne, %23, %c0_i32_21 : i32
    scf.if %24 {
      %c0_22 = arith.constant 0 : index
      %c0_23 = arith.constant 0 : index
      %c0_24 = arith.constant 0 : index
      %25 = vector.load %arg6[%c0_22, %c0_23, %c0_24] : memref<2x8x16xf32, #tpu.memory_space<vmem>>, vector<2x8x16xf32>
      %cst_25 = arith.constant dense<0.000000e+00> : vector<2x8xf32>
      %26 = vector.multi_reduction <add>, %25, %cst_25 [2] : vector<2x8x16xf32> to vector<2x8xf32>
      %27 = vector.shape_cast %26 : vector<2x8xf32> to vector<2x8x1xf32>
      %cst_26 = arith.constant dense<0.000000e+00> : vector<8x1xf32>
      %28 = vector.multi_reduction <add>, %27, %cst_26 [0] : vector<2x8x1xf32> to vector<8x1xf32>
      %29 = vector.shape_cast %28 : vector<8x1xf32> to vector<1x8x1xf32>
      %cst_27 = arith.constant 3.200000e+01 : f32
      %30 = vector.broadcast %cst_27 : f32 to vector<1x8x1xf32>
      %31 = arith.divf %29, %30 : vector<1x8x1xf32>
      %32 = vector.broadcast %31 : vector<1x8x1xf32> to vector<2x8x16xf32>
      %33 = arith.subf %25, %32 : vector<2x8x16xf32>
      %34 = arith.mulf %33, %33 : vector<2x8x16xf32>
      %cst_28 = arith.constant dense<0.000000e+00> : vector<2x8xf32>
      %35 = vector.multi_reduction <add>, %34, %cst_28 [2] : vector<2x8x16xf32> to vector<2x8xf32>
      %36 = vector.shape_cast %35 : vector<2x8xf32> to vector<2x8x1xf32>
      %cst_29 = arith.constant dense<0.000000e+00> : vector<8x1xf32>
      %37 = vector.multi_reduction <add>, %36, %cst_29 [0] : vector<2x8x1xf32> to vector<8x1xf32>
      %38 = vector.shape_cast %37 : vector<8x1xf32> to vector<1x8x1xf32>
      %cst_30 = arith.constant 3.200000e+01 : f32
      %39 = vector.broadcast %cst_30 : f32 to vector<1x8x1xf32>
      %40 = arith.divf %38, %39 : vector<1x8x1xf32>
      %c0_31 = arith.constant 0 : index
      %c0_32 = arith.constant 0 : index
      %c0_33 = arith.constant 0 : index
      %41 = vector.load %arg4[%c0_31, %c0_32, %c0_33] : memref<1x8x1xf32, #tpu.memory_space<vmem>>, vector<1x8x1xf32>
      %cst_34 = arith.constant 9.99999974E-6 : f32
      %42 = vector.broadcast %cst_34 : f32 to vector<1x8x1xf32>
      %43 = arith.addf %40, %42 : vector<1x8x1xf32>
      %44 = math.rsqrt %43 : vector<1x8x1xf32>
      %45 = arith.mulf %41, %44 : vector<1x8x1xf32>
      %c0_35 = arith.constant 0 : index
      %c0_36 = arith.constant 0 : index
      %c0_37 = arith.constant 0 : index
      %46 = vector.load %arg5[%c0_35, %c0_36, %c0_37] : memref<1x8x1xf32, #tpu.memory_space<vmem>>, vector<1x8x1xf32>
      %47 = arith.mulf %31, %45 : vector<1x8x1xf32>
      %48 = arith.subf %46, %47 : vector<1x8x1xf32>
      %49 = vector.broadcast %45 : vector<1x8x1xf32> to vector<2x8x16xf32>
      %50 = arith.mulf %25, %49 : vector<2x8x16xf32>
      %51 = vector.broadcast %48 : vector<1x8x1xf32> to vector<2x8x16xf32>
      %52 = arith.addf %50, %51 : vector<2x8x16xf32>
      %cst_38 = arith.constant 0.000000e+00 : f32
      %53 = vector.broadcast %cst_38 : f32 to vector<2x8x16xf32>
      %54 = arith.maximumf %52, %53 : vector<2x8x16xf32>
      %c0_39 = arith.constant 0 : index
      %c0_40 = arith.constant 0 : index
      %c0_41 = arith.constant 0 : index
      %55 = vector.load %arg6[%c0_39, %c0_40, %c0_41] : memref<2x8x16xf32, #tpu.memory_space<vmem>>, vector<2x8x16xf32>
      tpu.vector_store %arg6[%c0_39, %c0_40, %c0_41], %54 {strides = array<i32>} : memref<2x8x16xf32, #tpu.memory_space<vmem>>, vector<2x8x16xf32>,
    } else {
    }
    return
  }
  func.func @transform_0(%arg0: i32) -> (i32, i32, i32) {
    %c0_i32 = arith.constant 0 : i32
    %c0_i32_0 = arith.constant 0 : i32
    %c0_i32_1 = arith.constant 0 : i32
    return %arg0, %c0_i32, %c0_i32_0 : i32, i32, i32
  }
  func.func @transform_1(%arg0: i32) -> (i32, i32) {
    %c0_i32 = arith.constant 0 : i32
    %c0_i32_0 = arith.constant 0 : i32
    %c0_i32_1 = arith.constant 0 : i32
    return %c0_i32, %c0_i32_0 : i32, i32
  }
  func.func @transform_2(%arg0: i32) -> (i32, i32) {
    %c0_i32 = arith.constant 0 : i32
    %c0_i32_0 = arith.constant 0 : i32
    %c0_i32_1 = arith.constant 0 : i32
    return %c0_i32, %c0_i32_0 : i32, i32
  }
  func.func @transform_3(%arg0: i32) -> (i32, i32, i32) {
    %c0_i32 = arith.constant 0 : i32
    %c0_i32_0 = arith.constant 0 : i32
    %c0_i32_1 = arith.constant 0 : i32
    %c0_i32_2 = arith.constant 0 : i32
    return %c0_i32, %c0_i32_0, %c0_i32_1 : i32, i32, i32
  }
  func.func @transform_4(%arg0: i32) -> (i32, i32, i32) {
    %c0_i32 = arith.constant 0 : i32
    %c0_i32_0 = arith.constant 0 : i32
    %c0_i32_1 = arith.constant 0 : i32
    %c0_i32_2 = arith.constant 0 : i32
    return %c0_i32, %c0_i32_0, %c0_i32_1 : i32, i32, i32
  }
  func.func @transform_5(%arg0: i32) -> (i32, i32, i32) {
    %c0_i32 = arith.constant 0 : i32
    %c0_i32_0 = arith.constant 0 : i32
    %c0_i32_1 = arith.constant 0 : i32
    %c0_i32_2 = arith.constant 0 : i32
    return %c0_i32, %c0_i32_0, %c0_i32_1 : i32, i32, i32
  }
}

</mosaic_0001>

<bundles_post_ra>
// kernel: standard_conv1d_pallas.1
= control target key start
LH: loop header
LB: loop body
LE: loop exit
PB: predicated region body
PF: predicated region fallthrough
CT: control target
= control target key end

     0   :  { %10 = vsyncpa [#allocation5], 0  ;;  %s571_s18 = smov 0   ;;  %s637_s0 = inlined_call_operand.vmem [shape: f32[2,4,16], index: 0, kind: input, shape index: {}]   ;;  %s638_s1 = inlined_call_operand.vmem [shape: f32[8,12], index: 1, kind: input, shape index: {}]   ;;  %s639_s2 = inlined_call_operand.vmem [shape: f32[8,1], index: 2, kind: input, shape index: {}]   ;;  %s640_s3 = inlined_call_operand.vmem [shape: f32[1,8,1], index: 3, kind: input, shape index: {}]   ;;  %s641_s4 = inlined_call_operand.vmem [shape: f32[1,8,1], index: 4, kind: input, shape index: {}]   ;;  %s642_s5 = inlined_call_operand.hbm [shape: f32[2,8,16], index: 5, kind: output, shape index: {}]  }
   0x1 LB: > { %s577_s19 = sadd.s32 4294967295, %s526_s18   ;;  %p432_p0 = scmp.ge.s32.totalorder %s526_s18, 1  ;;  %s526_s18 = sphi %s571_s18, %s16_s18  }
   0x2   : > { %p182_p1 = scmp.lt.s32.totalorder %s526_s18, 3 }
   0x4   : > { %p183_p2 = pnand %p432_p0, %p182_p1 }
   0x5   : > { %p204_p3 = scmp.lt.s32.totalorder (!%p183_p2), %s577_s19, 1  ;;  %p434_p4 = scmp.ne.s32.totalorder (!%p183_p2), %s577_s19, 0 }
   0x6   : > { %186 = sbr.rel (%p183_p2) target bundleno = 980 (0x3d4), region = 40 }
   0xd   : > { %s205_s20 = scalar_select %p204_p3, %s577_s19, 1 }
   0xe   : > { %211 = sbr.rel (%p434_p4) target bundleno = 21 (0x15), region = 44  ;;  %vm212_vm0 = vcmask (!%p434_p4), 142336   ;;  %v528_v0 = vmov (!%p434_p4), 0.0  }
   0xf   : > { %s433_s21 = sshll.u32 %s205_s20, 2  ;;  %213 = vst.msk [vmem:[#allocation2] sm:$0xf] (!%p434_p4), %vm212_vm0, %v528_v0 }
  0x10   : > { %s207_s24 = scalar_lea.vmem %s637_s0, %s433_s21 }
  0x15 PF: > { %v214_v1 = vld [vmem:[%s207_s24] sm:$0xf]  ;;  %s529_s25 = smov 1   ;;  %v530_v2 = vmov 0.0|0.0   ;;  %vm219_vm1 = vcmask 134152   ;;  %vm222_vm2 = vcmask 125952  }
  0x16   : > { %216 = vrot.lane.b32.xlu0 %v214_v1, %s529_s25  ;;  %453 = vmatprep.subr.bf16.mxu0 %v530_v2  ;;  %vm531_vm3 = vmmov 0   ;;  %v532_v4 = vmov 0.0   ;;  %s533_s26 = smov 126   ;;  %s534_s27 = smov 127   ;;  %v535_v8 = vmov 0   ;;  %v239_v9 = vld [vmem:[%s639_s2] sm:$0xff] }
  0x17   : > { %450 = vmatprep.mubr.msk.f32.mxu0 %vm531_vm3, %v532_v4  ;;  %484 = vset.pattern.permute.xlu1 %v535_v8  ;;  %vm249_vm4 = vcmask 1043456   ;;  %vm536_vm5 = vmmov 1   ;;  %v236_v15 = vld [vmem:[%s638_s1] sm:$0xff]  ;;  %vm245_vm7 = vcmask 97280   ;;  %s437_s7 = sshll.u32 %s577_s19, 3  ;;  %vm325_vm8 = vcmask 130048  }
  0x18   : > { %485 = vset.pattern.permute.xlu0 %v535_v8  ;;  %vm455_vm6 = vmpackc.low %vm249_vm4, %vm536_vm5  ;;  %s324_s8 = scalar_lea.vmem [#allocation4], %s437_s7  ;;  %p438_p5 = scmp.ne.s32.totalorder %s577_s19, 1 }
  0x19   : > { %v537_v34 = vmov (!%p438_p5), 0   ;;  %v354_v40 = vld [vmem:[%s640_s3] sm:$0xff] (!%p438_p5) }
  0x1a   : > { %486 = vset.pattern.permute.xlu0 (!%p438_p5), %v537_v34  ;;  %v358_v43 = vld [vmem:[%s641_s4] sm:$0xff] (!%p438_p5) }
  0x88   : > { %v217_v3 = vpop.permute.xlu0 %216 }
  0x89   : > { %220 = vst.msk [vmem:[#allocation2] sm:$0xf] %vm219_vm1, %v217_v3 }
  0x90   : > { %v230_v5 = vld [vmem:[#allocation2] sm:$0xf] }
  0x91   : > { %v224_v6 = vld [vmem:[#allocation2] sm:$0xf]  ;;  %232 = vrot.lane.b32.xlu1 %v230_v5, %s533_s26 }
  0x92   : > { %v221_v7 = vld [vmem:[#allocation2] sm:$0xf]  ;;  %226 = vrot.lane.b32.xlu0 %v224_v6, %s534_s27 }
  0x93   : > { %223 = vst.msk [vmem:[#allocation3] sm:$0xf] %vm222_vm2, %v221_v7 }
  0x95   : > { %242 = vperm.xlu1 %484, %v239_v9  }
  0x99   : > { %487 = vset.pattern.permute.xlu1 (!%p438_p5), %v537_v34 }
 0x103   : > { %v233_v10 = vpop.permute.xlu1 %232 }
 0x104   : > { %v227_v11 = vpop.permute.xlu0 %226  ;;  %235 = vst.msk [vmem:[#allocation3 + $0x8] sm:$0xf] %vm222_vm2, %v233_v10 }
 0x105   : > { %229 = vst.msk [vmem:[#allocation3 + $0x4] sm:$0xf] %vm222_vm2, %v227_v11 }
 0x10b   : > { %v238_v13 = vld [vmem:[#allocation3 + $0x8] sm:$0xf] }
 0x10c   : > { %v237_v12 = vld [vmem:[#allocation3] sm:$0xff] }
 0x10d   : > { %v454_v14 = vpack.c.bf16 %v238_v13, %v237_v12 }
 0x10f   : > { %456 = vmatpush3.bf16.msk.msra.mxu0 %vm455_vm6, %v454_v14 }
 0x112   : > { %451 = vmatmul.mubr.msk.f32.vlgmr.msra.gmra.mrb[0].mxu0 %vm245_vm7, %v236_v15 }
 0x114   : > { %v243_v16 = vpop.permute.xlu1 %242 }
 0x1e2   : > { %330 = sbr.rel (%p438_p5) target bundleno = 954 (0x3ba), region = 48 }
 0x1e5   : > { %v319_v17 = vpop.f32.mrb[0].mxu0 }
 0x1e6   : > { %v320_v18 = vadd.f32 %v319_v17, %v243_v16  ;;  %v452_v19 = vpop.f32.mrb[1].mxu0 }
 0x1e8   : > { %326 = vst.msk [vmem:[%s324_s8] sm:$0xff] %vm325_vm8, %v320_v18 }
 0x1ef   : > { %v331_v20 = vld [vmem:[#allocation4] sm:$0xff]  ;;  %v332_v21 = vld [vmem:[#allocation4 + $0x8] sm:$0xff] }
 0x1f0   : > { %v333_v22 = vsel %vm325_vm8, %v331_v20, 0.0  ;;  %v336_v23 = vsel %vm325_vm8, %v332_v21, 0.0 }
 0x1f1   : > { %334 = vadd.xlane.f32.xlu0 %v333_v22 }
 0x1f5   : > { %337 = vadd.xlane.f32.xlu0 %v336_v23 }
 0x27e   : > { %v335_v24 = vpop.xlane.xlu0 %334 }
 0x282   : > { %v338_v25 = vpop.xlane.xlu0 %337 }
 0x283   : > { %v339_v26 = vadd.f32 %v338_v25, %v335_v24 }
 0x285   : > { %v341_v27 = vmul.f32 0.03125, %v339_v26 }
 0x287   : > { %v342_v28 = vsub.f32 %v331_v20, %v341_v27  ;;  %v343_v29 = vsub.f32 %v332_v21, %v341_v27 }
 0x289   : > { %v344_v30 = vmul.f32 %v342_v28, %v342_v28  ;;  %v345_v32 = vmul.f32 %v343_v29, %v343_v29 }
 0x28b   : > { %v346_v31 = vsel %vm325_vm8, %v344_v30, 0.0  ;;  %v349_v33 = vsel %vm325_vm8, %v345_v32, 0.0 }
 0x28c   : > { %347 = vadd.xlane.f32.xlu1 %v346_v31 }
 0x290   : > { %350 = vadd.xlane.f32.xlu1 %v349_v33 }
 0x319   : > { %v348_v35 = vpop.xlane.xlu1 %347 }
 0x31d   : > { %v351_v36 = vpop.xlane.xlu1 %350 }
 0x31e   : > { %v352_v37 = vadd.f32 %v351_v36, %v348_v35 }
 0x320   : > { %v353_v38 = vmul.f32 0.03125, %v352_v37 }
 0x322   : > { %v355_v39 = vadd.f32 1e-05, %v353_v38 }
 0x324   : > { %488 = vrsqrt.f32 %v355_v39 }
 0x32e   : > { %v489_v41 = vpop.eup %488 }
 0x32f   : > { %v357_v42 = vmul.f32 %v489_v41, %v354_v40 }
 0x331   : > { %363 = vperm.xlu0 %486, %v357_v42   ;;  %v359_v44 = vmul.f32 %v357_v42, %v341_v27 }
 0x333   : > { %v360_v45 = vsub.f32 %v358_v43, %v359_v44 }
 0x335   : > { %370 = vperm.xlu1 %487, %v360_v45  }
 0x3b0   : > { %v364_v46 = vpop.permute.xlu0 %363 }
 0x3b1   : > { %v366_v47 = vmul.f32 %v364_v46, %v331_v20  ;;  %v367_v48 = vmul.f32 %v364_v46, %v332_v21 }
 0x3b4   : > { %v371_v49 = vpop.permute.xlu1 %370 }
 0x3b5   : > { %v373_v50 = vadd.f32 %v371_v49, %v366_v47  ;;  %v374_v51 = vadd.f32 %v371_v49, %v367_v48 }
 0x3b7   : > { %v375_v52 = vmax.f32 %v373_v50, 0.0  ;;  %v376_v53 = vmax.f32 %v374_v51, 0.0 }
 0x3b9   : > { %377 = vst.msk [vmem:[#allocation4] sm:$0xff] %vm325_vm8, %v375_v52  ;;  %378 = vst.msk [vmem:[#allocation4 + $0x8] sm:$0xff] %vm325_vm8, %v376_v53 }
 0x3ba PF: > { %p461_p6 = scmp.eq.s32.totalorder %s577_s19, 1  ;;  %s538_s13 = smov [#allocation4]  }
 0x3bb   : > { %s385_s14 = sshll.u32 %s538_s13, 4  ;;  %s386_s14 = int_to_ptr.vmem [resolvable:$true] %s385_s14 }
 0x3bc   : > { %s490_s15 = scalar_lea.vmem %s386_s14, 256  ;;  %p497_p10 = scmp.lt.s32.totalorder %s386_s14, %s386_s14 }
 0x3bd   : > { %p491_p7 = scmp.ne.s32.totalorder %s386_s14, %s490_s15  ;;  %p498_p11 = scmp.lt.s32.totalorder %s490_s15, %s490_s15 }
 0x3bf   : > { %p492_p8 = pnand %p491_p7, %p461_p6  ;;  %p499_p12 = por %p498_p11, %p497_p10 }
 0x3c1   : > { %p493_p9 = pneg %p492_p8 }
 0x3c3   : > { %p500_p13 = pnand %p499_p12, %p493_p9 }
 0x3c5   : > { %503 = shalt.err (!%p500_p13)
}
 0x3c6   : > { %s504_s20 = scalar_lea.hbm %s642_s5, 256 }
 0x3c7   : > { %p505_p0 = scmp.ne.s32.totalorder %s642_s5, %s504_s20  ;;  %p510_p3 = scmp.lt.u32.totalorder %s504_s20, %s642_s5 }
 0x3c9   : > { %p506_p1 = pnand %p505_p0, %p461_p6 }
 0x3cb   : > { %p507_p2 = pneg %p506_p1 }
 0x3cd   : > { %p512_p4 = pnand %p510_p3, %p507_p2 }
 0x3cf   : > { %515 = shalt.err (!%p512_p4)
}
 0x3d0   : > { %s539_s25 = smov 128   ;;  %s540_s26 = smov 8  }
 0x3d1   : > { %458 = dma.vmem_to_hbm [thread:$0]  (%p461_p6), %s386_s14, 256, %s642_s5, [#allocation5], %s539_s25, %s539_s25, %s540_s26  }
 0x3d2   : > { %521 = dma.done.wait (%p461_p6), [#allocation5], 256  }
 0x3d3   : > { %523 = vsyncadd (%p461_p6), [#allocation5], 4294967040 }
 0x3d4 PF: > { %s16_s18 = sadd.s32 1, %s526_s18  }
 0x3d5   : > { %p13_p5 = scmp.ge.s32.totalorder %s16_s18, 4  }
 0x3d7   :  { %15 = sbr.rel (!%p13_p5) target bundleno = 1 (0x1), region = 76 }
 0x3de   :  { %401 = vsyncpa [#allocation5], 1 }
 0x3df   :  { %403 = vsyncpa [#allocation5 + $0x1], 1 }

</bundles_post_ra>
